<compile_context>
chip_gen: v7x
topology: tpu7x:2x2x1
jax: 0.10.0
libtpu: 0.0.40
codegen_flags: <defaults>
</compile_context>

<pallas_src>
import functools

import jax
import jax.numpy as jnp
from jax.experimental import pallas as pl
from jax.experimental.pallas import tpu as pltpu

HIDDEN = 64          # logical hidden width (matches nn.Linear(state_dim, 64))
LANE = 128           # TPU lane width: hidden dim is padded to this
TILE_B_MAX = 4096    # max batch rows per grid step
MIN_TILE_B = 512     # below this, extra grid steps are pure overhead
TARGET_STEPS = 4     # aim for >=4 grid steps when batch is large (v7x megacore/pipeline)


def _round_up(n, m):
    return ((n + m - 1) // m) * m


def _cdiv(a, b):
    return -(-a // b)


def _choose_tiling(batch):
    """Return (padded_batch, tile_b), both multiples of 8, padded_batch = steps*tile_b.

    Large batches get >=TARGET_STEPS grid steps (tiles >= MIN_TILE_B rows) so the
    'parallel' batch axis can be megacore-sharded and the pipeline has work to overlap;
    padding waste is bounded to at most steps*8 rows (vs. a whole tile previously)."""
    padded = _round_up(batch, 8)
    steps = _cdiv(padded, TILE_B_MAX)
    while steps < TARGET_STEPS and _round_up(_cdiv(padded, steps + 1), 8) >= MIN_TILE_B:
        steps += 1
    tile_b = _round_up(_cdiv(padded, steps), 8)
    return tile_b * steps, tile_b


def qnet_kernel(x_ref, w1_ref, b1_ref, w2_ref, b2_ref, w3_ref, b3_ref, o_ref,
                *, use_vpu_layer1):
    x = x_ref[...]

    if use_vpu_layer1:
        # K = state_dim is tiny (<= 8): an MXU pass here is almost entirely padding and
        # sits on the serialized critical path, so do layer 1 on the VPU (f32, exact).
        w1 = w1_ref[...]
        h1 = b1_ref[...] + sum(
            x[:, k:k + 1] * w1[k:k + 1, :] for k in range(x.shape[1]))
    else:
        h1 = jnp.dot(x.astype(jnp.bfloat16), w1_ref[...].astype(jnp.bfloat16),
                     preferred_element_type=jnp.float32) + b1_ref[...]
    h1 = jnp.maximum(h1, 0.0)

    # Layers 2/3: bf16 MXU operands, f32 accumulation (W2/W3 already stored bf16).
    h2 = jnp.dot(h1.astype(jnp.bfloat16), w2_ref[...],
                 preferred_element_type=jnp.float32) + b2_ref[...]
    h2 = jnp.maximum(h2, 0.0)

    out = jnp.dot(h2.astype(jnp.bfloat16), w3_ref[...],
                  preferred_element_type=jnp.float32) + b3_ref[...]
    # Narrow store: o_ref is (tile_b, action_dim); masked vst cost is negligible and
    # saves ~64x output HBM traffic vs. a 128-lane padded store for action_dim=2.
    o_ref[...] = out.astype(o_ref.dtype)


@functools.partial(jax.jit, static_argnames=("action_dim",))
def qnetwork_forward(x, padded_params, *, action_dim):
    """x: [batch, state_dim] f32. padded_params: kernel-layout weights from pad_params."""
    w1, b1, w2, b2, w3, b3 = padded_params
    batch, state_dim = x.shape
    hidden_p = w1.shape[1]
    out_n = w3.shape[1]
    assert out_n == action_dim, (out_n, action_dim)

    padded_batch, tile_b = _choose_tiling(batch)
    if padded_batch != batch:
        x = jnp.pad(x, ((0, padded_batch - batch), (0, 0)))
    grid = (padded_batch // tile_b,)

    def resident(shape):
        # Full array, same block every grid step -> DMA'd once, stays in VMEM.
        # (bf16 weights total <70 KiB, so default double-buffering is negligible.)
        return pl.BlockSpec(shape, lambda i: (0,) * len(shape))

    flops = 2 * padded_batch * (state_dim * hidden_p + hidden_p * hidden_p
                                + hidden_p * out_n)
    bytes_accessed = (x.size * x.dtype.itemsize
                      + sum(a.size * a.dtype.itemsize for a in padded_params)
                      + padded_batch * out_n * 4)

    kernel = functools.partial(qnet_kernel, use_vpu_layer1=(state_dim <= 8))

    out = pl.pallas_call(
        kernel,
        out_shape=jax.ShapeDtypeStruct((padded_batch, out_n), jnp.float32),
        grid=grid,
        in_specs=[
            pl.BlockSpec((tile_b, state_dim), lambda i: (i, 0)),   # x: tiled over batch
            resident(w1.shape), resident(b1.shape),
            resident(w2.shape), resident(b2.shape),
            resident(w3.shape), resident(b3.shape),
        ],
        out_specs=pl.BlockSpec((tile_b, out_n), lambda i: (i, 0)),  # narrow output
        compiler_params=pltpu.CompilerParams(
            dimension_semantics=("parallel",),   # megacore on v7x; harmless elsewhere
        ),
        cost_estimate=pl.CostEstimate(
            flops=flops, transcendentals=0, bytes_accessed=bytes_accessed),
    )(x, w1, b1, w2, b2, w3, b3)

    return out[:batch] if padded_batch != batch else out


def init_params(key, state_dim, action_dim, hidden=HIDDEN):
    """Deterministic init mimicking torch.nn.Linear default (uniform +/- 1/sqrt(fan_in)).
    Weights stored as [in_features, out_features] so the kernel does y = x @ W + b."""
    def linear_init(k, fan_in, fan_out):
        kw, kb = jax.random.split(k)
        bound = 1.0 / jnp.sqrt(jnp.float32(fan_in))
        w = jax.random.uniform(kw, (fan_in, fan_out), jnp.float32, -bound, bound)
        b = jax.random.uniform(kb, (1, fan_out), jnp.float32, -bound, bound)
        return w, b

    k1, k2, k3 = jax.random.split(key, 3)
    w1, b1 = linear_init(k1, state_dim, hidden)
    w2, b2 = linear_init(k2, hidden, hidden)
    w3, b3 = linear_init(k3, hidden, action_dim)
    return (w1, b1, w2, b2, w3, b3)


def pad_params(params, lane=LANE):
    """One-time param prep for the kernel:
      * hidden dim zero-padded to 128 lanes (math stays exact; padded cols are zero),
      * W3/b3 keep their real action_dim N (narrow output store, no wrapper col slice),
      * W2/W3 stored bf16 (MXU operands); W1 and all biases stay f32 (VPU path)."""
    w1, b1, w2, b2, w3, b3 = params
    hp = _round_up(w1.shape[1], lane)

    def pad_to(a, rows, cols):
        return jnp.pad(a, ((0, rows - a.shape[0]), (0, cols - a.shape[1])))

    return (pad_to(w1, w1.shape[0], hp),                        # (state, 128)   f32
            pad_to(b1, 1, hp),                                  # (1, 128)       f32
            pad_to(w2, hp, hp).astype(jnp.bfloat16),            # (128, 128)     bf16
            pad_to(b2, 1, hp),                                  # (1, 128)       f32
            pad_to(w3, hp, w3.shape[1]).astype(jnp.bfloat16),   # (128, action)  bf16
            b3)                                                 # (1, action)    f32


def reference_forward(x, params):
    w1, b1, w2, b2, w3, b3 = params
    h1 = jnp.maximum(x @ w1 + b1, 0.0)
    h2 = jnp.maximum(h1 @ w2 + b2, 0.0)
    return h2 @ w3 + b3


if __name__ == "__main__":
    key = jax.random.PRNGKey(0)
    k_params, k_x = jax.random.split(key)

    # Small RL-style shapes: batch=8 states of dim 4, 2 discrete actions.
    batch, state_dim, action_dim = 8, 4, 2

    params = init_params(k_params, state_dim, action_dim)
    padded_params = pad_params(params)
    x = jax.random.normal(k_x, (batch, state_dim), jnp.float32)

    out = qnetwork_forward(x, padded_params, action_dim=action_dim)
    out = jax.block_until_ready(out)

    ref = reference_forward(x, params)
    assert out.shape == (batch, action_dim), out.shape
    # Layers 2/3 use bf16 MXU operands with f32 accumulation -> loosened tolerance
    # vs. the pure-f32 reference.
    assert jnp.allclose(out, ref, atol=2e-2, rtol=2e-2), float(jnp.max(jnp.abs(out - ref)))

    print("KERNEL_OK")
</pallas_src>

<mosaic_0001>
module attributes {stable_mosaic.version = 11 : i64} {
  func.func @qnet_kernel(%arg0: i32, %arg1: memref<8x4xf32, #tpu.memory_space<vmem>>, %arg2: memref<4x128xf32, #tpu.memory_space<vmem>>, %arg3: memref<1x128xf32, #tpu.memory_space<vmem>>, %arg4: memref<128x128xbf16, #tpu.memory_space<vmem>>, %arg5: memref<1x128xf32, #tpu.memory_space<vmem>>, %arg6: memref<128x2xbf16, #tpu.memory_space<vmem>>, %arg7: memref<1x2xf32, #tpu.memory_space<vmem>>, %arg8: memref<8x2xf32, #tpu.memory_space<vmem>>) attributes {dimension_semantics = [#tpu.dimension_semantics<parallel>], iteration_bounds = array<i64: 1>, scalar_prefetch = 0 : i64, scratch_operands = 0 : i64, tpu.core_type = #tpu.core_type<tc>, window_params = [{transform_indices = @transform_0, window_bounds = array<i64: 8, 4>}, {pipeline_mode = #tpu.pipeline_mode<synchronous>, transform_indices = @transform_1, window_bounds = array<i64: 4, 128>}, {pipeline_mode = #tpu.pipeline_mode<synchronous>, transform_indices = @transform_2, window_bounds = array<i64: 1, 128>}, {pipeline_mode = #tpu.pipeline_mode<synchronous>, transform_indices = @transform_3, window_bounds = array<i64: 128, 128>}, {pipeline_mode = #tpu.pipeline_mode<synchronous>, transform_indices = @transform_4, window_bounds = array<i64: 1, 128>}, {pipeline_mode = #tpu.pipeline_mode<synchronous>, transform_indices = @transform_5, window_bounds = array<i64: 128, 2>}, {pipeline_mode = #tpu.pipeline_mode<synchronous>, transform_indices = @transform_6, window_bounds = array<i64: 1, 2>}, {transform_indices = @transform_7, window_bounds = array<i64: 8, 2>}]} {
    %c0 = arith.constant 0 : index
    %c0_0 = arith.constant 0 : index
    %0 = vector.load %arg1[%c0, %c0_0] : memref<8x4xf32, #tpu.memory_space<vmem>>, vector<8x4xf32>
    %c0_1 = arith.constant 0 : index
    %c0_2 = arith.constant 0 : index
    %1 = vector.load %arg2[%c0_1, %c0_2] : memref<4x128xf32, #tpu.memory_space<vmem>>, vector<4x128xf32>
    %c0_3 = arith.constant 0 : index
    %c0_4 = arith.constant 0 : index
    %2 = vector.load %arg3[%c0_3, %c0_4] : memref<1x128xf32, #tpu.memory_space<vmem>>, vector<1x128xf32>
    %3 = vector.extract_strided_slice %0 {offsets = [0, 0], sizes = [8, 1], strides = [1, 1]} : vector<8x4xf32> to vector<8x1xf32>
    %4 = vector.extract_strided_slice %1 {offsets = [0, 0], sizes = [1, 128], strides = [1, 1]} : vector<4x128xf32> to vector<1x128xf32>
    %5 = vector.broadcast %3 : vector<8x1xf32> to vector<8x128xf32>
    %6 = vector.broadcast %4 : vector<1x128xf32> to vector<8x128xf32>
    %7 = arith.mulf %5, %6 : vector<8x128xf32>
    %cst = arith.constant 0.000000e+00 : f32
    %8 = vector.broadcast %cst : f32 to vector<8x128xf32>
    %9 = arith.addf %8, %7 : vector<8x128xf32>
    %10 = vector.extract_strided_slice %0 {offsets = [0, 1], sizes = [8, 1], strides = [1, 1]} : vector<8x4xf32> to vector<8x1xf32>
    %11 = vector.extract_strided_slice %1 {offsets = [1, 0], sizes = [1, 128], strides = [1, 1]} : vector<4x128xf32> to vector<1x128xf32>
    %12 = vector.broadcast %10 : vector<8x1xf32> to vector<8x128xf32>
    %13 = vector.broadcast %11 : vector<1x128xf32> to vector<8x128xf32>
    %14 = arith.mulf %12, %13 : vector<8x128xf32>
    %15 = arith.addf %9, %14 : vector<8x128xf32>
    %16 = vector.extract_strided_slice %0 {offsets = [0, 2], sizes = [8, 1], strides = [1, 1]} : vector<8x4xf32> to vector<8x1xf32>
    %17 = vector.extract_strided_slice %1 {offsets = [2, 0], sizes = [1, 128], strides = [1, 1]} : vector<4x128xf32> to vector<1x128xf32>
    %18 = vector.broadcast %16 : vector<8x1xf32> to vector<8x128xf32>
    %19 = vector.broadcast %17 : vector<1x128xf32> to vector<8x128xf32>
    %20 = arith.mulf %18, %19 : vector<8x128xf32>
    %21 = arith.addf %15, %20 : vector<8x128xf32>
    %22 = vector.extract_strided_slice %0 {offsets = [0, 3], sizes = [8, 1], strides = [1, 1]} : vector<8x4xf32> to vector<8x1xf32>
    %23 = vector.extract_strided_slice %1 {offsets = [3, 0], sizes = [1, 128], strides = [1, 1]} : vector<4x128xf32> to vector<1x128xf32>
    %24 = vector.broadcast %22 : vector<8x1xf32> to vector<8x128xf32>
    %25 = vector.broadcast %23 : vector<1x128xf32> to vector<8x128xf32>
    %26 = arith.mulf %24, %25 : vector<8x128xf32>
    %27 = arith.addf %21, %26 : vector<8x128xf32>
    %28 = vector.broadcast %2 : vector<1x128xf32> to vector<8x128xf32>
    %29 = arith.addf %28, %27 : vector<8x128xf32>
    %cst_5 = arith.constant 0.000000e+00 : f32
    %30 = vector.broadcast %cst_5 : f32 to vector<8x128xf32>
    %31 = arith.maximumf %29, %30 : vector<8x128xf32>
    %32 = arith.truncf %31 : vector<8x128xf32> to vector<8x128xbf16>
    %c0_6 = arith.constant 0 : index
    %c0_7 = arith.constant 0 : index
    %33 = vector.load %arg4[%c0_6, %c0_7] : memref<128x128xbf16, #tpu.memory_space<vmem>>, vector<128x128xbf16>
    %cst_8 = arith.constant dense<0.000000e+00> : vector<8x128xf32>
    %34 = tpu.matmul %32, %33, %cst_8 {dimension_numbers = #tpu.dot_dimension_numbers<[1], [0], [0], [1], [0, 0, 1, 1], [], []>} : vector<8x128xbf16>, vector<128x128xbf16>, vector<8x128xf32> -> vector<8x128xf32>
    %c0_9 = arith.constant 0 : index
    %c0_10 = arith.constant 0 : index
    %35 = vector.load %arg5[%c0_9, %c0_10] : memref<1x128xf32, #tpu.memory_space<vmem>>, vector<1x128xf32>
    %36 = vector.broadcast %35 : vector<1x128xf32> to vector<8x128xf32>
    %37 = arith.addf %34, %36 : vector<8x128xf32>
    %cst_11 = arith.constant 0.000000e+00 : f32
    %38 = vector.broadcast %cst_11 : f32 to vector<8x128xf32>
    %39 = arith.maximumf %37, %38 : vector<8x128xf32>
    %40 = arith.truncf %39 : vector<8x128xf32> to vector<8x128xbf16>
    %c0_12 = arith.constant 0 : index
    %c0_13 = arith.constant 0 : index
    %41 = vector.load %arg6[%c0_12, %c0_13] : memref<128x2xbf16, #tpu.memory_space<vmem>>, vector<128x2xbf16>
    %cst_14 = arith.constant dense<0.000000e+00> : vector<8x2xf32>
    %42 = tpu.matmul %40, %41, %cst_14 {dimension_numbers = #tpu.dot_dimension_numbers<[1], [0], [0], [1], [0, 0, 1, 1], [], []>} : vector<8x128xbf16>, vector<128x2xbf16>, vector<8x2xf32> -> vector<8x2xf32>
    %c0_15 = arith.constant 0 : index
    %c0_16 = arith.constant 0 : index
    %43 = vector.load %arg7[%c0_15, %c0_16] : memref<1x2xf32, #tpu.memory_space<vmem>>, vector<1x2xf32>
    %44 = vector.broadcast %43 : vector<1x2xf32> to vector<8x2xf32>
    %45 = arith.addf %42, %44 : vector<8x2xf32>
    %c0_17 = arith.constant 0 : index
    %c0_18 = arith.constant 0 : index
    %46 = vector.load %arg8[%c0_17, %c0_18] : memref<8x2xf32, #tpu.memory_space<vmem>>, vector<8x2xf32>
    tpu.vector_store %arg8[%c0_17, %c0_18], %45 {strides = array<i32>} : memref<8x2xf32, #tpu.memory_space<vmem>>, vector<8x2xf32>,
    return
  }
  func.func @transform_0(%arg0: i32) -> (i32, i32) {
    %c0_i32 = arith.constant 0 : i32
    %c0_i32_0 = arith.constant 0 : i32
    return %arg0, %c0_i32 : i32, i32
  }
  func.func @transform_1(%arg0: i32) -> (i32, i32) {
    %c0_i32 = arith.constant 0 : i32
    %c0_i32_0 = arith.constant 0 : i32
    %c0_i32_1 = arith.constant 0 : i32
    return %c0_i32, %c0_i32_0 : i32, i32
  }
  func.func @transform_2(%arg0: i32) -> (i32, i32) {
    %c0_i32 = arith.constant 0 : i32
    %c0_i32_0 = arith.constant 0 : i32
    %c0_i32_1 = arith.constant 0 : i32
    return %c0_i32, %c0_i32_0 : i32, i32
  }
  func.func @transform_3(%arg0: i32) -> (i32, i32) {
    %c0_i32 = arith.constant 0 : i32
    %c0_i32_0 = arith.constant 0 : i32
    %c0_i32_1 = arith.constant 0 : i32
    return %c0_i32, %c0_i32_0 : i32, i32
  }
  func.func @transform_4(%arg0: i32) -> (i32, i32) {
    %c0_i32 = arith.constant 0 : i32
    %c0_i32_0 = arith.constant 0 : i32
    %c0_i32_1 = arith.constant 0 : i32
    return %c0_i32, %c0_i32_0 : i32, i32
  }
  func.func @transform_5(%arg0: i32) -> (i32, i32) {
    %c0_i32 = arith.constant 0 : i32
    %c0_i32_0 = arith.constant 0 : i32
    %c0_i32_1 = arith.constant 0 : i32
    return %c0_i32, %c0_i32_0 : i32, i32
  }
  func.func @transform_6(%arg0: i32) -> (i32, i32) {
    %c0_i32 = arith.constant 0 : i32
    %c0_i32_0 = arith.constant 0 : i32
    %c0_i32_1 = arith.constant 0 : i32
    return %c0_i32, %c0_i32_0 : i32, i32
  }
  func.func @transform_7(%arg0: i32) -> (i32, i32) {
    %c0_i32 = arith.constant 0 : i32
    %c0_i32_0 = arith.constant 0 : i32
    return %arg0, %c0_i32 : i32, i32
  }
}

</mosaic_0001>

<bundles_post_ra>
// kernel: qnetwork_forward.1
= control target key start
LH: loop header
LB: loop body
LE: loop exit
PB: predicated region body
PF: predicated region fallthrough
CT: control target
= control target key end

     0   :  { %v414_v0 = vmov 0   ;;  %v415_v2 = vmov 2   ;;  %v416_v4 = vmov 0.0   ;;  %v417_v6 = vmov 1   ;;  %s544_s0 = inlined_call_operand.vmem [shape: f32[8,4], index: 0, kind: input, shape index: {}]   ;;  %s545_s3 = inlined_call_operand.vmem [shape: bf16[128,128], index: 3, kind: input, shape index: {}]   ;;  %s546_s5 = inlined_call_operand.vmem [shape: bf16[128,2], index: 5, kind: input, shape index: {}]   ;;  %s547_s1 = inlined_call_operand.vmem [shape: f32[4,128], index: 1, kind: input, shape index: {}]   ;;  %s548_s2 = inlined_call_operand.vmem [shape: f32[1,128], index: 2, kind: input, shape index: {}]   ;;  %s549_s4 = inlined_call_operand.vmem [shape: f32[1,128], index: 4, kind: input, shape index: {}]   ;;  %s550_s6 = inlined_call_operand.vmem [shape: f32[1,2], index: 6, kind: input, shape index: {}]   ;;  %s551_s7 = inlined_call_operand.vmem [shape: f32[8,2], index: 7, kind: output, shape index: {}]  }
   0x1   :  { %393 = vset.pattern.permute.xlu0 %v414_v0  ;;  %v27_v1 = vld [vmem:[%s544_s0] sm:$0xff]  ;;  %395 = vset.pattern.permute.xlu1 %v415_v2  ;;  %v399_v5 = vld [vmem:[%s545_s3 + $0x8] sm:$0xff]   ;;  %v418_v7 = vmov 3   ;;  %v400_v8 = vld [vmem:[%s545_s3 + $0x10] sm:$0xff]   ;;  %vm419_vm0 = vmmov 0   ;;  %v35_v20 = vlaneseq  ;;  %vm304_vm1 = vcmask 15360  }
   0x2   :  { %32 = vperm.xlu0 %393, %v27_v1   ;;  %52 = vperm.xlu1 %395, %v27_v1   ;;  %v398_v3 = vld [vmem:[%s545_s3] sm:$0xff]   ;;  %v401_v9 = vld [vmem:[%s545_s3 + $0x18] sm:$0xff]   ;;  %v403_v11 = vld [vmem:[%s545_s3 + $0x28] sm:$0xff]  }
   0x3   :  { %347 = vmatprep.subr.bf16.mxu0 %v416_v4  ;;  %367 = vmatprep.subr.bf16.mxu1 %v416_v4  ;;  %v402_v10 = vld [vmem:[%s545_s3 + $0x20] sm:$0xff]   ;;  %v404_v13 = vld [vmem:[%s545_s3 + $0x30] sm:$0xff]   ;;  %v407_v14 = vld [vmem:[%s546_s5 + $0x8] sm:$0xff]   ;;  %v36_v21 = vshrl.u32 %v35_v20, 7 }
   0x4   :  { %348 = vmatpush3.bf16.msra.mxu0 %v398_v3  ;;  %363 = vmatprep.mubr.msk.bf16.mxu0 %vm419_vm0, %v416_v4  ;;  %v406_v12 = vld [vmem:[%s546_s5] sm:$0xff]   ;;  %v405_v15 = vld [vmem:[%s545_s3 + $0x38] sm:$0xff]   ;;  %v408_v16 = vld [vmem:[%s546_s5 + $0x10] sm:$0xff]  }
   0x5   :  { %349 = vmatprep.subr.bf16.mxu0 %v416_v4  ;;  %383 = vmatprep.mubr.msk.bf16.mxu1 %vm419_vm0, %v416_v4  ;;  %v409_v17 = vld [vmem:[%s546_s5 + $0x18] sm:$0xff]   ;;  %v410_v18 = vld [vmem:[%s546_s5 + $0x20] sm:$0xff]   ;;  %v411_v19 = vld [vmem:[%s546_s5 + $0x28] sm:$0xff]   ;;  %v37_v22 = vsub.s32 0, %v36_v21  ;;  %v47_v23 = vsub.s32 1, %v36_v21  ;;  %v57_v26 = vsub.s32 2, %v36_v21 }
   0x6   :  { %394 = vset.pattern.permute.xlu0 %v417_v6  ;;  %396 = vset.pattern.permute.xlu1 %v418_v7  ;;  %v28_v24 = vld [vmem:[%s547_s1] sm:$0xf]  ;;  %v67_v28 = vsub.s32 3, %v36_v21  ;;  %v412_v46 = vld [vmem:[%s546_s5 + $0x30] sm:$0xff]   ;;  %v413_v47 = vld [vmem:[%s546_s5 + $0x38] sm:$0xff]  }
   0x7   :  { %42 = vperm.xlu0 %394, %v27_v1   ;;  %62 = vperm.xlu1 %396, %v27_v1   ;;  %v38_v29 = vrot.slane %v28_v24, %v37_v22  ;;  %v48_v30 = vrot.slane %v28_v24, %v47_v23  ;;  %v58_v31 = vrot.slane %v28_v24, %v57_v26  ;;  %v310_v41 = vld [vmem:[%s548_s2] ss:$0 sm:$0xff] }
   0x8   :  { %350 = vmatpush3.bf16.msra.mxu0 %v399_v5  ;;  %368 = vmatpush3.bf16.msra.mxu1 %v406_v12  ;;  %v68_v32 = vrot.slane %v28_v24, %v67_v28  ;;  %v311_v48 = vld [vmem:[%s549_s4] ss:$0 sm:$0xff] }
   0x9   :  { %351 = vmatprep.subr.bf16.mxu0 %v416_v4  ;;  %369 = vmatprep.subr.bf16.mxu1 %v416_v4  ;;  %v320_v56 = vld [vmem:[%s550_s6] ss:$0 sm:$0xff] }
   0xb   :  { %397 = vset.pattern.permute.xlu0 %v418_v7 }
   0xc   :  { %352 = vmatpush3.bf16.msra.mxu0 %v400_v8  ;;  %370 = vmatpush3.bf16.msra.mxu1 %v407_v14 }
   0xd   :  { %353 = vmatprep.subr.bf16.mxu0 %v416_v4  ;;  %371 = vmatprep.subr.bf16.mxu1 %v416_v4 }
  0x10   :  { %354 = vmatpush3.bf16.msra.mxu0 %v401_v9  ;;  %372 = vmatpush3.bf16.msra.mxu1 %v408_v16 }
  0x11   :  { %355 = vmatprep.subr.bf16.mxu0 %v416_v4  ;;  %373 = vmatprep.subr.bf16.mxu1 %v416_v4 }
  0x14   :  { %356 = vmatpush3.bf16.msra.mxu0 %v402_v10  ;;  %374 = vmatpush3.bf16.msra.mxu1 %v409_v17 }
  0x15   :  { %357 = vmatprep.subr.bf16.mxu0 %v416_v4  ;;  %375 = vmatprep.subr.bf16.mxu1 %v416_v4 }
  0x18   :  { %358 = vmatpush3.bf16.msra.mxu0 %v403_v11  ;;  %376 = vmatpush3.bf16.msra.mxu1 %v410_v18 }
  0x19   :  { %359 = vmatprep.subr.bf16.mxu0 %v416_v4  ;;  %377 = vmatprep.subr.bf16.mxu1 %v416_v4 }
  0x1c   :  { %360 = vmatpush3.bf16.msra.mxu0 %v404_v13  ;;  %378 = vmatpush3.bf16.msra.mxu1 %v411_v19 }
  0x1d   :  { %361 = vmatprep.subr.bf16.mxu0 %v416_v4  ;;  %379 = vmatprep.subr.bf16.mxu1 %v416_v4 }
  0x20   :  { %362 = vmatpush3.bf16.msra.mxu0 %v405_v15  ;;  %380 = vmatpush3.bf16.msra.mxu1 %v412_v46 }
  0x21   :  { %381 = vmatprep.subr.bf16.mxu1 %v416_v4 }
  0x24   :  { %382 = vmatpush3.bf16.msra.mxu1 %v413_v47 }
  0x81   :  { %v33_v25 = vpop.permute.xlu0 %32  ;;  %v53_v27 = vpop.permute.xlu1 %52 }
  0x82   :  { %v39_v35 = vmul.f32 %v38_v29, %v33_v25  ;;  %v59_v37 = vmul.f32 %v58_v31, %v53_v27 }
  0x86   :  { %v43_v33 = vpop.permute.xlu0 %42  ;;  %v63_v34 = vpop.permute.xlu1 %62 }
  0x87   :  { %v49_v36 = vmul.f32 %v48_v30, %v43_v33  ;;  %v69_v39 = vmul.f32 %v68_v32, %v63_v34 }
  0x89   :  { %v50_v38 = vadd.f32 %v49_v36, %v39_v35 }
  0x8b   :  { %v60_v40 = vadd.f32 %v59_v37, %v50_v38 }
  0x8d   :  { %v70_v42 = vadd.f32 %v69_v39, %v60_v40 }
  0x8f   :  { %v77_v43 = vadd.f32 %v310_v41, %v70_v42 }
  0x91   :  { %v78_v44 = vmax.f32 %v77_v43, 0.0 }
  0x93   :  { %v79_v45 = vpack.c.bf16 %v78_v44, %v78_v44 }
  0x95   :  { %364 = vmatmul.mubr.bf16.vlgmr.msra.gmra.mrb[0].mxu0 %v79_v45 }
 0x168   :  { %v185_v49 = vpop.f32.mrb[0].mxu0 }
 0x169   :  { %v186_v50 = vadd.f32 %v311_v48, %v185_v49  ;;  %v365_v51 = vpop.f32.mrb[1].mxu0 }
 0x16a   :  { %v188_v52 = vpop.f32.mrb[2].mxu0 }
 0x16b   :  { %v191_v53 = vmax.f32 %v186_v50, 0.0  ;;  %v366_v54 = vpop.f32.mrb[3].mxu0 }
 0x16d   :  { %v192_v55 = vpack.c.bf16 %v191_v53, %v191_v53 }
 0x16f   :  { %384 = vmatmul.mubr.bf16.vlgmr.msra.gmra.mrb[0].mxu1 %v192_v55 }
 0x242   :  { %v298_v57 = vpop.f32.mrb[0].mxu1 }
 0x243   :  { %v299_v58 = vadd.f32 %v320_v56, %v298_v57  ;;  %v385_v59 = vpop.f32.mrb[1].mxu1 }
 0x244   :  { %v301_v60 = vpop.f32.mrb[2].mxu1 }
 0x245   :  { %305 = vst.msk [vmem:[%s551_s7] sm:$0xff] %vm304_vm1, %v299_v58  ;;  %v386_v61 = vpop.f32.mrb[3].mxu1 }

</bundles_post_ra>
